<compile_context>
chip_gen: v5e
topology: v5e:2x2
jax: 0.10.0
libtpu: 0.0.40
codegen_flags: <defaults>
</compile_context>

<pallas_src>
import functools

import numpy as np
import jax
import jax.numpy as jnp
from jax.experimental import pallas as pl
from jax.experimental.pallas import tpu as pltpu

ALPHA = 0.95
_LANE = 128
_SUBLANE = 8


def _round_up(x, m):
    return (x + m - 1) // m * m


def _vmem_capacity_bytes():
    """Per-core VMEM capacity; conservative fallback (v7x floor) if unknown."""
    try:
        info = pltpu.get_tpu_info()
        cap = getattr(info, "vmem_capacity_bytes", None)
        if cap:
            return int(cap)
    except Exception:
        pass
    return 64 * 1024 * 1024


def _pick_tiles(B, T, F, max_tf=None):
    """Generation-aware tile sizes: tk over time (K), tf over frequency columns."""
    Bp = _round_up(B, _SUBLANE)

    # K (time) tiling: ~1024-sample tiles, 128-aligned (so lhs column tiles are
    # lane-aligned and basis sublane tiles are aligned).
    nk = max(1, -(-T // 1024))
    tk = _round_up(-(-T // nk), _LANE)
    nk = -(-T // tk)
    T_pad = nk * tk

    cap = _vmem_capacity_bytes()
    budget = int(cap * 0.6)                       # headroom for compiler scratch
    vmem_limit = min(int(cap * 0.85), 110 * 1024 * 1024)

    lhs_db = 2 * 4 * Bp * tk * 2                  # bf16 lhs double buffer
    misc = 2 * 1024 * 1024
    # per-frequency-column VMEM cost: basis double buffer (bf16) + f32 K-accumulator
    # + (tiny) output double buffer.
    per_col = 2 * tk * 2 + 4 * Bp * 4 + 2 * Bp * 4
    avail = max(budget - lhs_db - misc, per_col * _LANE)
    tf_budget = (avail // per_col) // _LANE * _LANE
    if max_tf is not None:
        tf_budget = min(tf_budget, max_tf)

    f128 = _round_up(F, _LANE)
    if tf_budget >= 2 * f128:
        # Whole (cos | sin) basis band fits in one streamed tile -> single f-tile.
        F_pad = f128
        tf = 2 * f128
    else:
        tf = max(_LANE, min(tf_budget, f128))
        F_pad = _round_up(F, tf)
    nf = (2 * F_pad) // tf
    return Bp, tk, nk, T_pad, tf, nf, F_pad, vmem_limit


_BASIS_CACHE = {}


def _dft_basis_tiled(T, T_pad, F, F_pad, tk, tf):
    """Tile-major rDFT basis: [nk*nf, tk, tf] bfloat16, tile (k, j) at k*nf + j.

    In the flat [T_pad, 2*F_pad] layout, columns [0:F) hold cos(2*pi*n*k/T) and
    columns [F_pad:F_pad+F) hold -sin(2*pi*n*k/T) (rfft imag); all padding rows
    and columns are zero, so they never contribute to the sums."""
    key = (T, T_pad, F, F_pad, tk, tf)
    if key in _BASIS_CACHE:
        return _BASIS_CACHE[key]
    n = np.arange(T, dtype=np.int64)[:, None]
    k = np.arange(F, dtype=np.int64)[None, :]
    ang = 2.0 * np.pi * ((n * k) % T).astype(np.float64) / float(T)
    flat = np.zeros((T_pad, 2 * F_pad), dtype=np.float32)
    flat[:T, :F] = np.cos(ang)
    flat[:T, F_pad:F_pad + F] = -np.sin(ang)
    nk = T_pad // tk
    nf = (2 * F_pad) // tf
    tiled = flat.reshape(nk, tk, nf, tf).transpose(0, 2, 1, 3)
    tiled = np.ascontiguousarray(tiled).reshape(nk * nf, tk, tf)
    tiled = jnp.asarray(tiled).astype(jnp.bfloat16)
    _BASIS_CACHE[key] = tiled
    return tiled


def _pcm_partial_kernel(lhs_ref, basis_ref, out_ref, acc_ref, *, Bp, tf):
    """Grid = (frequency tiles [parallel], time/K tiles [arbitrary, last])."""
    k = pl.program_id(1)

    @pl.when(k == 0)
    def _init():
        acc_ref[...] = jnp.zeros_like(acc_ref)

    # Single fused MXU matmul for this (f-tile, K-tile): bf16 x bf16, f32 accumulate.
    acc_ref[...] += jnp.dot(lhs_ref[...], basis_ref[0],
                            preferred_element_type=jnp.float32)

    @pl.when(k == pl.num_programs(1) - 1)
    def _finalize():
        y = jnp.abs(acc_ref[...])                               # |Re| / |Im| of rDFT
        # Rows (sublane-aligned groups): 0:Bp pred, Bp:2Bp ref, 2Bp:3Bp mix-pred,
        # 3Bp:4Bp mix-ref.  Zero-padded rows/columns contribute exactly 0.
        d = (jnp.abs(y[0:Bp] - y[Bp:2 * Bp]) +
             jnp.abs(y[2 * Bp:3 * Bp] - y[3 * Bp:4 * Bp]))      # [Bp, tf]
        # Lane-chunk partial reduction: vreg-aligned slices + pure VPU adds.
        partial = d[:, 0:_LANE]
        for t in range(1, tf // _LANE):
            partial = partial + d[:, t * _LANE:(t + 1) * _LANE]
        out_ref[0] = partial                                    # [Bp, 128]


def loss_lt_lpcm(pred_wave, ref_wave, mixture, max_tf=None):
    """pred_wave / ref_wave / mixture: float32 [B, T].  Returns scalar loss."""
    B, T = pred_wave.shape
    F = T // 2 + 1
    Bp, tk, nk, T_pad, tf, nf, F_pad, vmem_limit = _pick_tiles(B, T, F, max_tf)
    basis = _dft_basis_tiled(T, T_pad, F, F_pad, tk, tf)        # [nk*nf, tk, tf] bf16

    # Fused LHS [4*Bp, T_pad]: each group zero-padded to Bp sublane rows and the
    # time axis zero-padded to T_pad; bf16 halves its (re-streamed) HBM traffic.
    def prep(x):
        return jnp.pad(x, ((0, Bp - B), (0, T_pad - T)))

    lhs = jnp.concatenate(
        [prep(pred_wave), prep(ref_wave),
         prep(mixture - pred_wave), prep(mixture - ref_wave)],
        axis=0,
    ).astype(jnp.bfloat16)

    kernel = functools.partial(_pcm_partial_kernel, Bp=Bp, tf=tf)

    partials = pl.pallas_call(
        kernel,
        out_shape=jax.ShapeDtypeStruct((nf, Bp, _LANE), jnp.float32),
        grid=(nf, nk),                                          # reduction axis last
        in_specs=[
            pl.BlockSpec((4 * Bp, tk), lambda j, k: (0, k)),            # waveforms
            pl.BlockSpec((1, tk, tf), lambda j, k: (k * nf + j, 0, 0)),  # basis tile
        ],
        out_specs=pl.BlockSpec((1, Bp, _LANE), lambda j, k: (j, 0, 0)),
        scratch_shapes=[pltpu.VMEM((4 * Bp, tf), jnp.float32)],
        compiler_params=pltpu.CompilerParams(
            dimension_semantics=("parallel", "arbitrary"),
            vmem_limit_bytes=vmem_limit,
        ),
    )(lhs, basis)

    # Loss_PCM: (sm(pred,ref) + sm(mix-pred,mix-ref)) / 2, sm = (mean|dRe|+mean|dIm|)/2
    #          -> total abs-diff sum / (4*B*F).
    loss_pcm = jnp.sum(partials) * (1.0 / (4.0 * B * F))
    # Loss_LT: tiny O(B*T) elementwise reduction done in the wrapper (keeps the
    # frequency grid axis 'parallel' for v7x megacore), in full f32.
    loss_lt = jnp.mean(jnp.abs(pred_wave - ref_wave))
    return ALPHA * loss_lt + (1.0 - ALPHA) * loss_pcm


def _reference_loss(pred, ref, mix):
    # Pure-JAX reference matching the PyTorch module semantics.
    def sm(a, b):
        A = jnp.fft.rfft(a)
        B_ = jnp.fft.rfft(b)
        l1 = jnp.mean(jnp.abs(jnp.abs(A.real) - jnp.abs(B_.real)))
        l2 = jnp.mean(jnp.abs(jnp.abs(A.imag) - jnp.abs(B_.imag)))
        return (l1 + l2) / 2.0

    lt = jnp.mean(jnp.abs(pred - ref))
    pcm = (sm(pred, ref) + sm(mix - pred, mix - ref)) / 2.0
    return ALPHA * lt + (1.0 - ALPHA) * pcm


if __name__ == "__main__":
    key = jax.random.PRNGKey(0)

    # Small shapes consistent with the module: waveform batch 2, length 128.
    B, T = 2, 128
    k1, k2, k3 = jax.random.split(key, 3)
    pred = jax.random.normal(k1, (B, T), dtype=jnp.float32)
    ref = jax.random.normal(k2, (B, T), dtype=jnp.float32)
    mix = jax.random.normal(k3, (B, T), dtype=jnp.float32)

    loss = jax.block_until_ready(loss_lt_lpcm(pred, ref, mix))
    expected = jax.block_until_ready(_reference_loss(pred, ref, mix))
    np.testing.assert_allclose(np.asarray(loss), np.asarray(expected),
                               rtol=1e-3, atol=2e-4)

    # Second check exercising the multi-tile paths (nk > 1 K-accumulation and
    # nf > 1 frequency tiles via a forced small tf).
    B2, T2 = 2, 2048
    k4, k5, k6 = jax.random.split(jax.random.PRNGKey(1), 3)
    pred2 = jax.random.normal(k4, (B2, T2), dtype=jnp.float32)
    ref2 = jax.random.normal(k5, (B2, T2), dtype=jnp.float32)
    mix2 = jax.random.normal(k6, (B2, T2), dtype=jnp.float32)

    loss2 = jax.block_until_ready(loss_lt_lpcm(pred2, ref2, mix2, max_tf=512))
    expected2 = jax.block_until_ready(_reference_loss(pred2, ref2, mix2))
    np.testing.assert_allclose(np.asarray(loss2), np.asarray(expected2),
                               rtol=1e-3, atol=2e-4)

    print("KERNEL_OK")
</pallas_src>

<mosaic_0001>
module attributes {stable_mosaic.version = 11 : i64} {
  func.func @_pcm_partial_kernel(%arg0: i32, %arg1: i32, %arg2: memref<32x128xbf16, #tpu.memory_space<vmem>>, %arg3: memref<1x128x256xbf16, #tpu.memory_space<vmem>>, %arg4: memref<1x8x128xf32, #tpu.memory_space<vmem>>, %arg5: memref<32x256xf32, #tpu.memory_space<vmem>>) attributes {dimension_semantics = [#tpu.dimension_semantics<parallel>, #tpu.dimension_semantics<arbitrary>], iteration_bounds = array<i64: 1, 1>, scalar_prefetch = 0 : i64, scratch_operands = 1 : i64, tpu.core_type = #tpu.core_type<tc>, window_params = [{transform_indices = @transform_0, window_bounds = array<i64: 32, 128>}, {transform_indices = @transform_1, window_bounds = array<i64: 1, 128, 256>}, {transform_indices = @transform_2, window_bounds = array<i64: 1, 8, 128>}]} {
    %c0_i32 = arith.constant 0 : i32
    %0 = arith.cmpi eq, %arg1, %c0_i32 : i32
    %1 = arith.extui %0 : i1 to i32
    %c0_i32_0 = arith.constant 0 : i32
    %2 = arith.cmpi ne, %1, %c0_i32_0 : i32
    scf.if %2 {
      %cst_11 = arith.constant 0.000000e+00 : f32
      %13 = vector.broadcast %cst_11 : f32 to vector<32x256xf32>
      %c0_12 = arith.constant 0 : index
      %c0_13 = arith.constant 0 : index
      %14 = vector.load %arg5[%c0_12, %c0_13] : memref<32x256xf32, #tpu.memory_space<vmem>>, vector<32x256xf32>
      tpu.vector_store %arg5[%c0_12, %c0_13], %13 {strides = array<i32>} : memref<32x256xf32, #tpu.memory_space<vmem>>, vector<32x256xf32>,
    } else {
    }
    %c0 = arith.constant 0 : index
    %c0_1 = arith.constant 0 : index
    %3 = vector.load %arg5[%c0, %c0_1] : memref<32x256xf32, #tpu.memory_space<vmem>>, vector<32x256xf32>
    %c0_2 = arith.constant 0 : index
    %c0_3 = arith.constant 0 : index
    %4 = vector.load %arg2[%c0_2, %c0_3] : memref<32x128xbf16, #tpu.memory_space<vmem>>, vector<32x128xbf16>
    %c0_4 = arith.constant 0 : index
    %c0_5 = arith.constant 0 : index
    %c0_6 = arith.constant 0 : index
    %5 = vector.load %arg3[%c0_4, %c0_5, %c0_6] : memref<1x128x256xbf16, #tpu.memory_space<vmem>>, vector<1x128x256xbf16>
    %6 = vector.shape_cast %5 : vector<1x128x256xbf16> to vector<128x256xbf16>
    %cst = arith.constant dense<0.000000e+00> : vector<32x256xf32>
    %7 = tpu.matmul %4, %6, %cst {dimension_numbers = #tpu.dot_dimension_numbers<[1], [0], [0], [1], [0, 0, 1, 1], [], []>} : vector<32x128xbf16>, vector<128x256xbf16>, vector<32x256xf32> -> vector<32x256xf32>
    %8 = arith.addf %3, %7 : vector<32x256xf32>
    %c0_7 = arith.constant 0 : index
    %c0_8 = arith.constant 0 : index
    %9 = vector.load %arg5[%c0_7, %c0_8] : memref<32x256xf32, #tpu.memory_space<vmem>>, vector<32x256xf32>
    tpu.vector_store %arg5[%c0_7, %c0_8], %8 {strides = array<i32>} : memref<32x256xf32, #tpu.memory_space<vmem>>, vector<32x256xf32>,
    %c0_i32_9 = arith.constant 0 : i32
    %10 = arith.cmpi eq, %arg1, %c0_i32_9 : i32
    %11 = arith.extui %10 : i1 to i32
    %c0_i32_10 = arith.constant 0 : i32
    %12 = arith.cmpi ne, %11, %c0_i32_10 : i32
    scf.if %12 {
      %c0_11 = arith.constant 0 : index
      %c0_12 = arith.constant 0 : index
      %13 = vector.load %arg5[%c0_11, %c0_12] : memref<32x256xf32, #tpu.memory_space<vmem>>, vector<32x256xf32>
      %14 = math.absf %13 : vector<32x256xf32>
      %15 = vector.extract_strided_slice %14 {offsets = [0, 0], sizes = [8, 256], strides = [1, 1]} : vector<32x256xf32> to vector<8x256xf32>
      %16 = vector.extract_strided_slice %14 {offsets = [8, 0], sizes = [8, 256], strides = [1, 1]} : vector<32x256xf32> to vector<8x256xf32>
      %17 = arith.subf %15, %16 : vector<8x256xf32>
      %18 = math.absf %17 : vector<8x256xf32>
      %19 = vector.extract_strided_slice %14 {offsets = [16, 0], sizes = [8, 256], strides = [1, 1]} : vector<32x256xf32> to vector<8x256xf32>
      %20 = vector.extract_strided_slice %14 {offsets = [24, 0], sizes = [8, 256], strides = [1, 1]} : vector<32x256xf32> to vector<8x256xf32>
      %21 = arith.subf %19, %20 : vector<8x256xf32>
      %22 = math.absf %21 : vector<8x256xf32>
      %23 = arith.addf %18, %22 : vector<8x256xf32>
      %24 = vector.extract_strided_slice %23 {offsets = [0, 0], sizes = [8, 128], strides = [1, 1]} : vector<8x256xf32> to vector<8x128xf32>
      %25 = vector.extract_strided_slice %23 {offsets = [0, 128], sizes = [8, 128], strides = [1, 1]} : vector<8x256xf32> to vector<8x128xf32>
      %26 = arith.addf %24, %25 : vector<8x128xf32>
      %c0_13 = arith.constant 0 : index
      %c0_14 = arith.constant 0 : index
      %c0_15 = arith.constant 0 : index
      %27 = vector.load %arg4[%c0_13, %c0_14, %c0_15] : memref<1x8x128xf32, #tpu.memory_space<vmem>>, vector<1x8x128xf32>
      %28 = vector.shape_cast %27 : vector<1x8x128xf32> to vector<8x128xf32>
      %29 = vector.shape_cast %26 : vector<8x128xf32> to vector<1x8x128xf32>
      tpu.vector_store %arg4[%c0_13, %c0_14, %c0_15], %29 {strides = array<i32>} : memref<1x8x128xf32, #tpu.memory_space<vmem>>, vector<1x8x128xf32>,
    } else {
    }
    return
  }
  func.func @transform_0(%arg0: i32, %arg1: i32) -> (i32, i32) {
    %c0_i32 = arith.constant 0 : i32
    %c0_i32_0 = arith.constant 0 : i32
    return %c0_i32, %arg1 : i32, i32
  }
  func.func @transform_1(%arg0: i32, %arg1: i32) -> (i32, i32, i32) {
    %c1_i32 = arith.constant 1 : i32
    %0 = arith.muli %arg1, %c1_i32 : i32
    %1 = arith.addi %0, %arg0 : i32
    %c0_i32 = arith.constant 0 : i32
    %c0_i32_0 = arith.constant 0 : i32
    %c0_i32_1 = arith.constant 0 : i32
    return %1, %c0_i32, %c0_i32_0 : i32, i32, i32
  }
  func.func @transform_2(%arg0: i32, %arg1: i32) -> (i32, i32, i32) {
    %c0_i32 = arith.constant 0 : i32
    %c0_i32_0 = arith.constant 0 : i32
    %c0_i32_1 = arith.constant 0 : i32
    return %arg0, %c0_i32, %c0_i32_0 : i32, i32, i32
  }
}

</mosaic_0001>

<bundles_post_ra>
// kernel: tpu_custom_call.1
= control target key start
LH: loop header
LB: loop body
LE: loop exit
PB: predicated region body
PF: predicated region fallthrough
CT: control target
= control target key end

     0   :  { %7 = vsyncpa [#allocation4], 0  ;;  %s506_s0 = inlined_call_operand.hbm [shape: bf16[32,128], index: 0, kind: input, shape index: {}]   ;;  %s507_s1 = inlined_call_operand.hbm [shape: bf16[1,128,256], index: 1, kind: input, shape index: {}]   ;;  %s508_s2 = inlined_call_operand.hbm [shape: f32[1,8,128], index: 2, kind: output, shape index: {}]  }
   0x1   :  { %8 = vsyncpa [#allocation7], 0 }
   0x2   :  { %9 = vsyncpa [#allocation5], 0  ;;  %s14_s11 = sshll.u32 %s506_s0, 4  ;;  %s475_s12 = smov [#allocation3]   ;;  %s15_s11 = int_to_ptr.hbm [resolvable:$true] %s14_s11 }
   0x3   :  { %s16_s13 = sshll.u32 %s475_s12, 4  ;;  %s31_s16 = sshll.u32 %s507_s1, 4  ;;  %s17_s13 = int_to_ptr.vmem [resolvable:$true] %s16_s13  ;;  %s32_s16 = int_to_ptr.hbm [resolvable:$true] %s31_s16 }
   0x4   :  { %s476_s17 = smov 64   ;;  %s477_s18 = smov 4  }
   0x5   :  { %22 = dma.hbm_to_vmem [thread:$0]  %s15_s11, 256, %s17_s13, [#allocation4], %s476_s17, %s476_s17, %s477_s18  }
   0x6   :  { %s478_s19 = smov [#allocation6]   ;;  %s479_s21 = smov 128  }
   0x7   :  { %s33_s20 = sshll.u32 %s478_s19, 4  ;;  %s480_s22 = smov 8   ;;  %s34_s20 = int_to_ptr.vmem [resolvable:$true] %s33_s20 }
   0x8   :  { %39 = dma.hbm_to_vmem [thread:$0]  %s32_s16, 2048, %s34_s20, [#allocation7], %s479_s21, %s479_s21, %s480_s22  }
   0x9   :  { %469 = dma.done.wait [#allocation4], 256  }
   0xa   :  { %470 = vsyncadd [#allocation4], 4294967040 }
   0xb   :  { %471 = dma.done.wait [#allocation7], 2048  }
   0xc   :  { %472 = vsyncadd [#allocation7], 4294965248  ;;  %v350_v0 = vld [vmem:[#allocation6 + $0x70] sm:$0xf]  ;;  %v373_v1 = vld [vmem:[#allocation6 + $0x74] sm:$0xf0] }
   0xd   :  { %v372_v2 = vld [vmem:[#allocation6 + $0x74] sm:$0xf]  ;;  %v351_v3 = vor.u32 %v373_v1, %v350_v0  ;;  %v352_v4 = vld [vmem:[#allocation6 + $0x78] sm:$0xf0]  ;;  %v342_v5 = vld [vmem:[#allocation6 + $0x60] sm:$0xf] }
   0xe   :  { %v371_v6 = vld [vmem:[#allocation6 + $0x64] sm:$0xf0]  ;;  %v355_v7 = vor.u32 %v372_v2, %v352_v4  ;;  %v370_v8 = vld [vmem:[#allocation6 + $0x64] sm:$0xf]  ;;  %v344_v9 = vld [vmem:[#allocation6 + $0x68] sm:$0xf0] }
   0xf   :  { %181 = vmatpush.bf16.msra.mxu0 %v351_v3  ;;  %374 = vmatpush.bf16.msra.mxu2 %v351_v3  ;;  %v343_v10 = vor.u32 %v371_v6, %v342_v5  ;;  %v347_v11 = vor.u32 %v370_v8, %v344_v9  ;;  %v334_v12 = vld [vmem:[#allocation6 + $0x50] sm:$0xf]  ;;  %v369_v13 = vld [vmem:[#allocation6 + $0x54] sm:$0xf0]  ;;  %v368_v14 = vld [vmem:[#allocation6 + $0x54] sm:$0xf] }
  0x10   :  { %200 = vmatpush.bf16.msra.mxu1 %v355_v7  ;;  %382 = vmatpush.bf16.msra.mxu3 %v355_v7  ;;  %v336_v15 = vld [vmem:[#allocation6 + $0x58] sm:$0xf0]  ;;  %v335_v16 = vor.u32 %v369_v13, %v334_v12  ;;  %v326_v18 = vld [vmem:[#allocation6 + $0x40] sm:$0xf]  ;;  %v367_v19 = vld [vmem:[#allocation6 + $0x44] sm:$0xf0] }
  0x11   :  { %v339_v17 = vor.u32 %v368_v14, %v336_v15  ;;  %v366_v20 = vld [vmem:[#allocation6 + $0x44] sm:$0xf]  ;;  %v328_v21 = vld [vmem:[#allocation6 + $0x48] sm:$0xf0]  ;;  %v327_v22 = vor.u32 %v367_v19, %v326_v18  ;;  %v318_v24 = vld [vmem:[#allocation6 + $0x30] sm:$0xf] }
  0x12   :  { %v331_v23 = vor.u32 %v366_v20, %v328_v21  ;;  %v365_v25 = vld [vmem:[#allocation6 + $0x34] sm:$0xf0]  ;;  %v364_v26 = vld [vmem:[#allocation6 + $0x34] sm:$0xf]  ;;  %v320_v27 = vld [vmem:[#allocation6 + $0x38] sm:$0xf0] }
  0x13   :  { %182 = vmatpush.bf16.msra.mxu0 %v343_v10  ;;  %375 = vmatpush.bf16.msra.mxu2 %v343_v10  ;;  %v319_v28 = vor.u32 %v365_v25, %v318_v24  ;;  %v323_v29 = vor.u32 %v364_v26, %v320_v27  ;;  %v310_v30 = vld [vmem:[#allocation6 + $0x20] sm:$0xf]  ;;  %v363_v31 = vld [vmem:[#allocation6 + $0x24] sm:$0xf0]  ;;  %v362_v32 = vld [vmem:[#allocation6 + $0x24] sm:$0xf] }
  0x14   :  { %201 = vmatpush.bf16.msra.mxu1 %v347_v11  ;;  %383 = vmatpush.bf16.msra.mxu3 %v347_v11  ;;  %v312_v33 = vld [vmem:[#allocation6 + $0x28] sm:$0xf0]  ;;  %v311_v34 = vor.u32 %v363_v31, %v310_v30  ;;  %v302_v36 = vld [vmem:[#allocation6 + $0x10] sm:$0xf]  ;;  %v361_v37 = vld [vmem:[#allocation6 + $0x14] sm:$0xf0] }
  0x15   :  { %v315_v35 = vor.u32 %v362_v32, %v312_v33  ;;  %v360_v38 = vld [vmem:[#allocation6 + $0x14] sm:$0xf]  ;;  %v304_v39 = vld [vmem:[#allocation6 + $0x18] sm:$0xf0]  ;;  %v303_v40 = vor.u32 %v361_v37, %v302_v36  ;;  %v294_v42 = vld [vmem:[#allocation6] sm:$0xf] }
  0x16   :  { %v307_v41 = vor.u32 %v360_v38, %v304_v39  ;;  %v359_v43 = vld [vmem:[#allocation6 + $0x4] sm:$0xf0]  ;;  %v358_v44 = vld [vmem:[#allocation6 + $0x4] sm:$0xf]  ;;  %v296_v45 = vld [vmem:[#allocation6 + $0x8] sm:$0xf0] }
  0x17   :  { %183 = vmatpush.bf16.msra.mxu0 %v335_v16  ;;  %376 = vmatpush.bf16.msra.mxu2 %v335_v16  ;;  %v295_v46 = vor.u32 %v359_v43, %v294_v42  ;;  %v299_v47 = vor.u32 %v358_v44, %v296_v45  ;;  %v356_v48 = vld [vmem:[#allocation3] sm:$0xff]  ;;  %v357_v49 = vld [vmem:[#allocation3 + $0x8] sm:$0xff]  ;;  %s481_s0 = smov [#allocation8]   ;;  %s273_s25 = sshll.u32 %s508_s2, 4  ;;  %s274_s25 = int_to_ptr.hbm [resolvable:$true] %s273_s25 }
  0x18   :  { %202 = vmatpush.bf16.msra.mxu1 %v339_v17  ;;  %384 = vmatpush.bf16.msra.mxu3 %v339_v17  ;;  %s271_s1 = sshll.u32 %s481_s0, 4  ;;  %s272_s1 = int_to_ptr.vmem [resolvable:$true] %s271_s1 }
  0x1b   :  { %184 = vmatpush.bf16.msra.mxu0 %v327_v22  ;;  %377 = vmatpush.bf16.msra.mxu2 %v327_v22 }
  0x1c   :  { %203 = vmatpush.bf16.msra.mxu1 %v331_v23  ;;  %385 = vmatpush.bf16.msra.mxu3 %v331_v23 }
  0x1f   :  { %185 = vmatpush.bf16.msra.mxu0 %v319_v28  ;;  %378 = vmatpush.bf16.msra.mxu2 %v319_v28 }
  0x20   :  { %204 = vmatpush.bf16.msra.mxu1 %v323_v29  ;;  %386 = vmatpush.bf16.msra.mxu3 %v323_v29 }
  0x23   :  { %186 = vmatpush.bf16.msra.mxu0 %v311_v34  ;;  %379 = vmatpush.bf16.msra.mxu2 %v311_v34 }
  0x24   :  { %205 = vmatpush.bf16.msra.mxu1 %v315_v35  ;;  %387 = vmatpush.bf16.msra.mxu3 %v315_v35 }
  0x27   :  { %187 = vmatpush.bf16.msra.mxu0 %v303_v40  ;;  %380 = vmatpush.bf16.msra.mxu2 %v303_v40 }
  0x28   :  { %206 = vmatpush.bf16.msra.mxu1 %v307_v41  ;;  %388 = vmatpush.bf16.msra.mxu3 %v307_v41 }
  0x2b   :  { %188 = vmatpush.bf16.msra.mxu0 %v295_v46  ;;  %381 = vmatpush.bf16.msra.mxu2 %v295_v46 }
  0x2c   :  { %207 = vmatpush.bf16.msra.mxu1 %v299_v47  ;;  %389 = vmatpush.bf16.msra.mxu3 %v299_v47 }
  0x2e   :  { %189 = vmatmul.bf16.vlgmr.msra.gmra.mxu0 %v356_v48  ;;  %194 = vmatmul.bf16.vlgmr.msra.gmra.mxu2 %v357_v49 }
  0x2f   :  { %208 = vmatmul.bf16.vlgmr.msra.gmra.mxu1 %v356_v48  ;;  %213 = vmatmul.bf16.vlgmr.msra.gmra.mxu3 %v357_v49 }
  0xab   :  { %v190_v50 = vpop.f32.mrf.mxu0 }
  0xac   :  { %v209_v51 = vpop.f32.mrf.mxu1  ;;  %v246_v58 = vand.u32 2147483647, %v190_v50 }
  0xad   :  { %v247_v59 = vand.u32 2147483647, %v209_v51 }
  0xb1   :  { %v195_v52 = vpop.f32.mrf.mxu2 }
  0xb2   :  { %v214_v53 = vpop.f32.mrf.mxu3  ;;  %v250_v61 = vand.u32 2147483647, %v195_v52 }
  0xb3   :  { %v192_v54 = vpop.f32.mrf.mxu0  ;;  %v251_v1 = vand.u32 2147483647, %v214_v53 }
  0xb4   :  { %v211_v55 = vpop.f32.mrf.mxu1  ;;  %v248_v56 = vand.u32 2147483647, %v192_v54 }
  0xb5   :  { %v249_v57 = vand.u32 2147483647, %v211_v55 }
  0xb6   :  { %v254_v62 = vsub.f32 %v246_v58, %v248_v56 }
  0xb7   :  { %v255_v2 = vsub.f32 %v247_v59, %v249_v57 }
  0xb8   :  { %v256_v6 = vand.u32 2147483647, %v254_v62 }
  0xb9   :  { %v197_v60 = vpop.f32.mrf.mxu2  ;;  %v257_v8 = vand.u32 2147483647, %v255_v2 }
  0xba   :  { %v252_v63 = vand.u32 2147483647, %v197_v60  ;;  %v216_v0 = vpop.f32.mrf.mxu3 }
  0xbb   :  { %v253_v3 = vand.u32 2147483647, %v216_v0 }
  0xbc   :  { %v258_v4 = vsub.f32 %v250_v61, %v252_v63 }
  0xbd   :  { %v259_v5 = vsub.f32 %v251_v1, %v253_v3 }
  0xbe   :  { %v260_v7 = vand.u32 2147483647, %v258_v4 }
  0xbf   :  { %v261_v9 = vand.u32 2147483647, %v259_v5 }
  0xc0   :  { %v262_v10 = vadd.f32 %v260_v7, %v256_v6 }
  0xc1   :  { %v263_v11 = vadd.f32 %v261_v9, %v257_v8 }
  0xc3   :  { %v264_v12 = vadd.f32 %v263_v11, %v262_v10 }
  0xc5   :  { %265 = vst [vmem:[#allocation8] sm:$0xff] %v264_v12 }
  0xc6   :  { %276 = dma.vmem_to_hbm [thread:$0]  %s272_s1, 128, %s274_s25, [#allocation5]  }
  0xc7   :  { %473 = dma.done.wait [#allocation5], 128  }
  0xc8   :  { %474 = vsyncadd [#allocation5], 4294967168 }
  0xc9   :  { %281 = vsyncpa [#allocation4], 1 }
  0xca   :  { %282 = vsyncpa [#allocation7], 1 }
  0xcb   :  { %283 = vsyncpa [#allocation5], 1 }

</bundles_post_ra>
